<compile_context>
chip_gen: v7x
topology: tpu7x:2x2x1
jax: 0.10.0
libtpu: 0.0.40
codegen_flags: <defaults>
</compile_context>

<pallas_src>
import functools

import jax
import jax.numpy as jnp
from jax.experimental import pallas as pl
from jax.experimental.pallas import tpu as pltpu


# ----------------------------------------------------------------------------
# Kernels
# ----------------------------------------------------------------------------
def _feature_transform_kernel(x_ref, w_ref, s_ref, t_ref):
    """T[R] = s[R] * (X[R] @ W)   (layer-1 feature transform, row tiled)."""
    t_ref[...] = s_ref[...] * jnp.dot(
        x_ref[...], w_ref[...], preferred_element_type=jnp.float32
    )


def _layer1_kernel(a_ref, t1_ref, s_ref, b1_ref, w2_ref, t2_ref, *, tile_m):
    """Per row tile R:
         H[R]  = relu( s[R] * (A[R,:] @ T1 + T1[R]) + b1 )     # aggregate + self loop
         T2[R] = s[R] * (H[R] @ W2)                            # fused layer-2 transform
    """
    row0 = pl.multiple_of(pl.program_id(0) * tile_m, tile_m)
    t1_own = t1_ref[pl.ds(row0, tile_m), :]                       # self-loop term (TM, HP)

    # Aggregate: adjacency streamed as bf16 (exact 0/1), accumulate in f32.
    agg = jnp.dot(
        a_ref[...].astype(jnp.float32), t1_ref[...],
        preferred_element_type=jnp.float32,
    )                                                             # (TM, HP)
    h = jnp.maximum(s_ref[...] * (agg + t1_own) + b1_ref[...], 0.0)
    t2_ref[...] = s_ref[...] * jnp.dot(
        h, w2_ref[...], preferred_element_type=jnp.float32
    )


def _layer2_kernel(a_ref, t2_ref, s_ref, b2_ref, out_ref, *, tile_m):
    """Per row tile R:  OUT[R] = s[R] * (A[R,:] @ T2 + T2[R]) + b2."""
    row0 = pl.multiple_of(pl.program_id(0) * tile_m, tile_m)
    t2_own = t2_ref[pl.ds(row0, tile_m), :]
    agg = jnp.dot(
        a_ref[...].astype(jnp.float32), t2_ref[...],
        preferred_element_type=jnp.float32,
    )
    out_ref[...] = s_ref[...] * (agg + t2_own) + b2_ref[...]


# ----------------------------------------------------------------------------
# Wrapper
# ----------------------------------------------------------------------------
def _pick_tile_m(n):
    # Prefer 256-wide row slabs (v6e MXU is 2x256x256); 128 is fine on v5e.
    # At large N keep 2 * tm * n * 2B (double-buffered bf16 A slabs) plus the
    # resident (N, 128) operands under ~48 MiB for v7x's 64 MiB VMEM.
    for tm in (256, 128, 64, 32, 16, 8):
        if n % tm == 0 and n // tm >= 2:
            return tm
    return n  # tiny graph: single slab


def _round_up(v, m):
    return -(-v // m) * m


def gnn_classifier_forward(x, edge_index, w1, b1, w2, b2):
    """x: (N, F) f32, edge_index: (2, E) int32 (undirected, no self-loops)."""
    n, f = x.shape
    hidden = w1.shape[1]
    num_classes = w2.shape[1]
    hpad = max(128, _round_up(hidden, 128))
    cpad = max(128, _round_up(num_classes, 128))

    # ---- plain-JAX glue ----------------------------------------------------
    # Dense adjacency WITHOUT self loops (duplicate edges collapse to 1.0,
    # matching the unweighted/undirected case of the original module).
    adj = jnp.zeros((n, n), jnp.float32).at[edge_index[0], edge_index[1]].set(1.0)
    # Self loop handled analytically: deg = rowsum(A) + 1 (>= 1, so rsqrt is
    # safe).  Assumes a symmetric edge list, as in the original module.
    s = jax.lax.rsqrt(adj.sum(axis=1, keepdims=True) + 1.0)        # (N, 1) f32
    adj = adj.astype(jnp.bfloat16)                                 # halve HBM bytes for A

    # Lane-pad parameters to 128-wide so all matmuls/stores are lane dense;
    # the zero padding keeps the extra lanes exactly zero through both layers.
    w1p = jnp.zeros((f, hpad), jnp.float32).at[:, :hidden].set(w1)
    b1p = jnp.zeros((1, hpad), jnp.float32).at[:, :hidden].set(b1)
    w2p = jnp.zeros((hpad, cpad), jnp.float32).at[:hidden, :num_classes].set(w2)
    b2p = jnp.zeros((1, cpad), jnp.float32).at[:, :num_classes].set(b2)

    tm = _pick_tile_m(n)
    grid = (n // tm,)
    params = pltpu.CompilerParams(dimension_semantics=("parallel",))
    # NOTE: vmem_limit_bytes left at default (tiny footprint here); at large N
    # raise it toward ~100 MiB on v5e/v6e, keep usage <= ~48 MiB on v7x.

    row_blk = lambda shape: pl.BlockSpec(shape, lambda i: (i, 0))   # per row tile
    res_blk = lambda shape: pl.BlockSpec(shape, lambda i: (0, 0))   # resident / constant

    # T1 = s * (X @ W1), row tiled.
    t1 = pl.pallas_call(
        _feature_transform_kernel,
        out_shape=jax.ShapeDtypeStruct((n, hpad), jnp.float32),
        grid=grid,
        in_specs=[row_blk((tm, f)), res_blk((f, hpad)), row_blk((tm, 1))],
        out_specs=row_blk((tm, hpad)),
        compiler_params=params,
    )(x, w1p, s)

    # Layer-1 aggregate + ReLU + fused layer-2 transform:  T2 = s * (H @ W2).
    t2 = pl.pallas_call(
        functools.partial(_layer1_kernel, tile_m=tm),
        out_shape=jax.ShapeDtypeStruct((n, cpad), jnp.float32),
        grid=grid,
        in_specs=[
            row_blk((tm, n)),          # adjacency slab (bf16)
            res_blk((n, hpad)),        # T1 resident
            row_blk((tm, 1)),          # s rows
            res_blk((1, hpad)),        # b1 (constant block index -> loaded once)
            res_blk((hpad, cpad)),     # W2 resident
        ],
        out_specs=row_blk((tm, cpad)),
        compiler_params=params,
    )(adj, t1, s, b1p, w2p)

    # Layer-2 aggregate:  OUT = s * (A @ T2 + T2) + b2.
    out = pl.pallas_call(
        functools.partial(_layer2_kernel, tile_m=tm),
        out_shape=jax.ShapeDtypeStruct((n, cpad), jnp.float32),
        grid=grid,
        in_specs=[
            row_blk((tm, n)),
            res_blk((n, cpad)),
            row_blk((tm, 1)),
            res_blk((1, cpad)),
        ],
        out_specs=row_blk((tm, cpad)),
        compiler_params=params,
    )(adj, t2, s, b2p)

    return out[:, :num_classes]


def _glorot(key, shape):
    fan_in, fan_out = shape
    limit = jnp.sqrt(6.0 / (fan_in + fan_out))
    return jax.random.uniform(key, shape, jnp.float32, -limit, limit)


if __name__ == "__main__":
    N = 256            # number of nodes (gives a 2-step row grid with TM=128)
    IN_CHANNELS = 16
    HIDDEN = 32
    NUM_CLASSES = 2

    key = jax.random.PRNGKey(0)
    kx, kw1, kb1, kw2, kb2 = jax.random.split(key, 5)

    # Node features
    x = jax.random.normal(kx, (N, IN_CHANNELS), jnp.float32)

    # Undirected ring graph: edges in both directions, no self-loops.
    src = jnp.arange(N, dtype=jnp.int32)
    dst = (src + 1) % N
    edge_index = jnp.stack(
        [jnp.concatenate([src, dst]), jnp.concatenate([dst, src])], axis=0
    )  # (2, 2N)

    # Deterministic parameters (GCNConv weight: (in, out), bias: (out,))
    w1 = _glorot(kw1, (IN_CHANNELS, HIDDEN))
    b1 = 0.1 * jax.random.normal(kb1, (HIDDEN,), jnp.float32)
    w2 = _glorot(kw2, (HIDDEN, NUM_CLASSES))
    b2 = 0.1 * jax.random.normal(kb2, (NUM_CLASSES,), jnp.float32)

    out = gnn_classifier_forward(x, edge_index, w1, b1, w2, b2)
    out = jax.block_until_ready(out)

    # Pure-JAX reference check (explicit A_norm materialization).
    adj = jnp.zeros((N, N), jnp.float32).at[edge_index[0], edge_index[1]].set(1.0)
    a_hat = adj + jnp.eye(N, dtype=jnp.float32)
    dinv = 1.0 / jnp.sqrt(a_hat.sum(-1))
    a_norm = dinv[:, None] * a_hat * dinv[None, :]
    ref = a_norm @ jnp.maximum(a_norm @ x @ w1 + b1, 0.0) @ w2 + b2
    assert out.shape == ref.shape
    assert jnp.allclose(out, ref, atol=1e-4, rtol=1e-4), "mismatch vs reference"

    print("KERNEL_OK")
</pallas_src>

<mosaic_0001>
module attributes {stable_mosaic.version = 11 : i64} {
  func.func @_feature_transform_kernel(%arg0: i32, %arg1: memref<128x16xf32, #tpu.memory_space<vmem>>, %arg2: memref<16x128xf32, #tpu.memory_space<vmem>>, %arg3: memref<128x1xf32, #tpu.memory_space<vmem>>, %arg4: memref<128x128xf32, #tpu.memory_space<vmem>>) attributes {dimension_semantics = [#tpu.dimension_semantics<parallel>], iteration_bounds = array<i64: 2>, scalar_prefetch = 0 : i64, scratch_operands = 0 : i64, tpu.core_type = #tpu.core_type<tc>, window_params = [{transform_indices = @transform_0, window_bounds = array<i64: 128, 16>}, {pipeline_mode = #tpu.pipeline_mode<synchronous>, transform_indices = @transform_1, window_bounds = array<i64: 16, 128>}, {transform_indices = @transform_2, window_bounds = array<i64: 128, 1>}, {transform_indices = @transform_3, window_bounds = array<i64: 128, 128>}]} {
    %c0 = arith.constant 0 : index
    %c0_0 = arith.constant 0 : index
    %0 = vector.load %arg3[%c0, %c0_0] : memref<128x1xf32, #tpu.memory_space<vmem>>, vector<128x1xf32>
    %c0_1 = arith.constant 0 : index
    %c0_2 = arith.constant 0 : index
    %1 = vector.load %arg1[%c0_1, %c0_2] : memref<128x16xf32, #tpu.memory_space<vmem>>, vector<128x16xf32>
    %c0_3 = arith.constant 0 : index
    %c0_4 = arith.constant 0 : index
    %2 = vector.load %arg2[%c0_3, %c0_4] : memref<16x128xf32, #tpu.memory_space<vmem>>, vector<16x128xf32>
    %cst = arith.constant dense<0.000000e+00> : vector<128x128xf32>
    %3 = tpu.matmul %1, %2, %cst {dimension_numbers = #tpu.dot_dimension_numbers<[1], [0], [0], [1], [0, 0, 1, 1], [], []>} : vector<128x16xf32>, vector<16x128xf32>, vector<128x128xf32> -> vector<128x128xf32>
    %4 = vector.broadcast %0 : vector<128x1xf32> to vector<128x128xf32>
    %5 = arith.mulf %4, %3 : vector<128x128xf32>
    %c0_5 = arith.constant 0 : index
    %c0_6 = arith.constant 0 : index
    %6 = vector.load %arg4[%c0_5, %c0_6] : memref<128x128xf32, #tpu.memory_space<vmem>>, vector<128x128xf32>
    tpu.vector_store %arg4[%c0_5, %c0_6], %5 {strides = array<i32>} : memref<128x128xf32, #tpu.memory_space<vmem>>, vector<128x128xf32>,
    return
  }
  func.func @transform_0(%arg0: i32) -> (i32, i32) {
    %c0_i32 = arith.constant 0 : i32
    %c0_i32_0 = arith.constant 0 : i32
    return %arg0, %c0_i32 : i32, i32
  }
  func.func @transform_1(%arg0: i32) -> (i32, i32) {
    %c0_i32 = arith.constant 0 : i32
    %c0_i32_0 = arith.constant 0 : i32
    %c0_i32_1 = arith.constant 0 : i32
    return %c0_i32, %c0_i32_0 : i32, i32
  }
  func.func @transform_2(%arg0: i32) -> (i32, i32) {
    %c0_i32 = arith.constant 0 : i32
    %c0_i32_0 = arith.constant 0 : i32
    return %arg0, %c0_i32 : i32, i32
  }
  func.func @transform_3(%arg0: i32) -> (i32, i32) {
    %c0_i32 = arith.constant 0 : i32
    %c0_i32_0 = arith.constant 0 : i32
    return %arg0, %c0_i32 : i32, i32
  }
}

</mosaic_0001>

<bundles_post_ra>
// kernel: tpu_custom_call.1
= control target key start
LH: loop header
LB: loop body
LE: loop exit
PB: predicated region body
PF: predicated region fallthrough
CT: control target
= control target key end

     0   :  { %8 = vsyncpa [#allocation3], 0  ;;  %s1023_s0 = inlined_call_operand.vmem [shape: f32[256,16], index: 0, kind: input, shape index: {}]   ;;  %s1024_s1 = inlined_call_operand.vmem [shape: f32[16,128], index: 1, kind: input, shape index: {}]   ;;  %s1025_s2 = inlined_call_operand.vmem [shape: f32[256,1], index: 2, kind: input, shape index: {}]   ;;  %s1026_s3 = inlined_call_operand.hbm [shape: f32[256,128], index: 3, kind: output, shape index: {}]  }
   0x1   :  { %10 = vsyncpa [#allocation3 + $0x1], 0  ;;  %s837_s12 = smov 0   ;;  %s839_s13 = smov 0  }
   0x2   :  { %s841_s14 = smov 0   ;;  %s843_s15 = smov 0  }
   0x3 LB: > { %s858_s16 = sadd.s32 4294967295, %s811_s15   ;;  %s622_s17 = sadd.s32 4294967294, %s811_s15   ;;  %s811_s15 = sphi %s843_s15, %s1032_s15   ;;  %s807_s14 = sphi %s841_s14, %s1031_s14   ;;  %s803_s13 = sphi %s839_s13, %s1030_s13   ;;  %s799_s12 = sphi %s837_s12, %s1029_s12  }
   0x4   : > { %s862_s18 = sadd.s32 1, %s811_s15   ;;  %s96_s19 = sadd.s32 1, %s807_s14 }
   0x5   : > { %s93_s20 = ssub.s32 %s811_s15, %s862_s18  ;;  %p106_p0 = scmp.ne.s32.totalorder %s807_s14, %s803_s13 }
   0x6   : > { %p94_p1 = scmp.eq.s32.totalorder %s93_s20, 0  ;;  %p107_p2 = scmp.eq.s32.totalorder %s858_s16, 1 }
   0x7   : > { %p112_p3 = scmp.ne.s32.totalorder %s803_s13, %s799_s12  ;;  %p113_p4 = scmp.eq.s32.totalorder %s622_s17, 1 }
   0x8   : > { %s873_s21 = scalar_select %p94_p1, %s807_s14, %s96_s19  }
   0x9   : > { %p875_p5 = por %p107_p2, %p106_p0  ;;  %p879_p6 = por %p113_p4, %p112_p3 }
   0xa   : > { %p625_p7 = scmp.ge.s32.totalorder %s811_s15, 1  ;;  %p152_p8 = scmp.lt.s32.totalorder %s811_s15, 3 }
   0xc   : > { %p153_p9 = pnand %p625_p7, %p152_p8 }
   0xd   : > { %v226_v0 = vld [vmem:[%s1024_s1] sm:$0xff] (!%p153_p9)  ;;  %v227_v1 = vld [vmem:[%s1024_s1 + $0x8] sm:$0xff] (!%p153_p9)  ;;  %s627_s28 = sshll.u32 (!%p153_p9), %s858_s16, 4  ;;  %v813_v3 = vmov (!%p153_p9), 0   ;;  %vm228_vm0 = vcmask (!%p153_p9), 130048   ;;  %s178_s9 = sand.u32 (!%p153_p9), 1, %s803_s13  }
   0xe   : > { %156 = sbr.rel (%p153_p9) target bundleno = 269 (0x10d), region = 32  ;;  %v699_v2 = vpack.c.bf16 (!%p153_p9), %v227_v1, %v226_v0  ;;  %p182_p10 = scmp.lt.s32.totalorder (!%p153_p9), %s627_s28, 31  ;;  %748 = vset.pattern.permute.xlu1 (!%p153_p9), %v813_v3  ;;  %747 = vset.pattern.permute.xlu0 (!%p153_p9), %v813_v3 }
   0xf   : > { %s626_s10 = sshll.u32 (!%p153_p9), %s178_s9, 7  ;;  %s652_s17 = sshll.u32 (!%p153_p9), %s858_s16, 11 }
  0x10   : > { %700 = vmatprep.subr.bf16.mxu0 (!%p153_p9), %v699_v2  ;;  %703 = vmatprep.subr.bf16.mxu1 (!%p153_p9), %v699_v2  ;;  %s953_s11 = scalar_lea.vmem (!%p153_p9), [#allocation2], %s626_s10  ;;  %s972_s24 = scalar_lea.hbm (!%p153_p9), %s1026_s3, %s652_s17 }
  0x11   : > { %702 = vmatpush3.bf16.msra.mxu0 (!%p153_p9), %v699_v2  ;;  %704 = vmatpush3.bf16.msra.mxu1 (!%p153_p9), %v699_v2  ;;  %s548_s19 = sshll.u32 (!%p153_p9), %s953_s11, 4  ;;  %s982_s25 = scalar_lea.sflag (!%p153_p9), [#allocation3], %s178_s9  ;;  %s974_s19 = int_to_ptr.vmem [resolvable:$true] %s548_s19 }
  0x12   : > { %s749_s26 = scalar_lea.vmem (!%p153_p9), %s974_s19, 2048  ;;  %s814_s27 = smov (!%p153_p9), [#allocation2]  }
  0x13   : > { %p750_p11 = scmp.ne.s32.totalorder (!%p153_p9), %s974_s19, %s749_s26 }
  0x15   : > { %s1034_s28 = smov (!%p182_p10, %s627_s28), 31  ;;  %p751_p12 = pnand %p750_p11, %p875_p5 }
  0x16   : > { %s628_s29 = sshll.u32 %s1034_s28, 3  ;;  %s753_s28 = sshll.u32 %s814_s27, 4  ;;  %s754_s28 = int_to_ptr.vmem [resolvable:$false] %s753_s28 }
  0x17   : > { %s895_s5 = scalar_lea.vmem %s1023_s0, %s628_s29  ;;  %s910_s8 = scalar_lea.vmem %s1025_s2, %s628_s29 }
  0x18   : > { %v210_v4 = vld [vmem:[%s895_s5] sm:$0xff]  ;;  %v211_v6 = vld [vmem:[%s895_s5 + $0x8] sm:$0xff]  ;;  %v212_v8 = vld [vmem:[%s895_s5 + $0x10] sm:$0xff]  ;;  %p752_p13 = pneg %p751_p12  ;;  %s755_s29 = scalar_lea.vmem %s754_s28, 4096 }
  0x19   : > { %v218_v5 = vld [vmem:[%s895_s5 + $0x40] sm:$0xff]  ;;  %675 = vmatprep.mubr.msk.f32.mxu0 %vm228_vm0, %v210_v4  ;;  %v219_v7 = vld [vmem:[%s895_s5 + $0x48] sm:$0xff]  ;;  %v220_v9 = vld [vmem:[%s895_s5 + $0x50] sm:$0xff]  ;;  %p756_p0 = scmp.lt.s32.totalorder %s974_s19, %s754_s28  ;;  %p757_p1 = scmp.lt.s32.totalorder %s755_s29, %s749_s26 }
  0x1a   : > { %687 = vmatprep.mubr.msk.f32.mxu1 %vm228_vm0, %v218_v5  ;;  %676 = vmatmul.mubr.msk.f32.vlgmr.msra.gmra.mrb[0].mxu0 %vm228_vm0, %v211_v6  ;;  %v213_v10 = vld [vmem:[%s895_s5 + $0x18] sm:$0xff]  ;;  %v214_v12 = vld [vmem:[%s895_s5 + $0x20] sm:$0xff]  ;;  %v196_v14 = vld [vmem:[%s910_s8 + $0x10] sm:$0xff] }
  0x1b   : > { %688 = vmatmul.mubr.msk.f32.vlgmr.msra.gmra.mrb[0].mxu1 %vm228_vm0, %v219_v7  ;;  %678 = vmatprep.mubr.msk.f32.mxu0 %vm228_vm0, %v212_v8  ;;  %v221_v11 = vld [vmem:[%s895_s5 + $0x58] sm:$0xff]  ;;  %v222_v13 = vld [vmem:[%s895_s5 + $0x60] sm:$0xff]  ;;  %v215_v16 = vld [vmem:[%s895_s5 + $0x28] sm:$0xff]  ;;  %p758_p2 = por %p757_p1, %p756_p0 }
  0x1c   : > { %690 = vmatprep.mubr.msk.f32.mxu1 %vm228_vm0, %v220_v9  ;;  %v194_v15 = vld [vmem:[%s910_s8] sm:$0xff]  ;;  %v223_v17 = vld [vmem:[%s895_s5 + $0x68] sm:$0xff]  ;;  %v216_v18 = vld [vmem:[%s895_s5 + $0x30] sm:$0xff]  ;;  %434 = vperm.xlu1 %748, %v196_v14  }
  0x1d   : > { %v224_v19 = vld [vmem:[%s895_s5 + $0x70] sm:$0xff]  ;;  %424 = vperm.xlu0 %747, %v194_v15   ;;  %v197_v20 = vld [vmem:[%s910_s8 + $0x18] sm:$0xff]  ;;  %v195_v21 = vld [vmem:[%s910_s8 + $0x8] sm:$0xff]  ;;  %p759_p3 = pnand %p758_p2, %p752_p13 }
  0x1e   : > { %679 = vmatmul.mubr.msk.f32.gmra.mrb[2].mxu0 %vm228_vm0, %v213_v10  ;;  %v217_v22 = vld [vmem:[%s895_s5 + $0x38] sm:$0xff]  ;;  %v199_v24 = vld [vmem:[%s910_s8 + $0x28] sm:$0xff]  ;;  %v198_v25 = vld [vmem:[%s910_s8 + $0x20] sm:$0xff] }
  0x1f   : > { %691 = vmatmul.mubr.msk.f32.gmra.mrb[2].mxu1 %vm228_vm0, %v221_v11  ;;  %681 = vmatprep.mubr.msk.f32.mxu0 %vm228_vm0, %v214_v12  ;;  %v225_v23 = vld [vmem:[%s895_s5 + $0x78] sm:$0xff]  ;;  %v200_v27 = vld [vmem:[%s910_s8 + $0x30] sm:$0xff]  ;;  %v203_v28 = vld [vmem:[%s910_s8 + $0x48] sm:$0xff] }
  0x20   : > { %693 = vmatprep.mubr.msk.f32.mxu1 %vm228_vm0, %v222_v13  ;;  %439 = vperm.xlu1 %748, %v197_v20   ;;  %v201_v26 = vld [vmem:[%s910_s8 + $0x38] sm:$0xff]  ;;  %v202_v29 = vld [vmem:[%s910_s8 + $0x40] sm:$0xff]  ;;  %v204_v31 = vld [vmem:[%s910_s8 + $0x50] sm:$0xff] }
  0x21   : > { %429 = vperm.xlu0 %747, %v195_v21   ;;  %v205_v30 = vld [vmem:[%s910_s8 + $0x58] sm:$0xff]  ;;  %v207_v32 = vld [vmem:[%s910_s8 + $0x68] sm:$0xff]  ;;  %v206_v33 = vld [vmem:[%s910_s8 + $0x60] sm:$0xff] }
  0x22   : > { %682 = vmatmul.mubr.msk.f32.gmra.mrb[4].mxu0 %vm228_vm0, %v215_v16  ;;  %v209_v34 = vld [vmem:[%s910_s8 + $0x78] sm:$0xff]  ;;  %v208_v35 = vld [vmem:[%s910_s8 + $0x70] sm:$0xff] }
  0x23   : > { %694 = vmatmul.mubr.msk.f32.gmra.mrb[4].mxu1 %vm228_vm0, %v223_v17  ;;  %684 = vmatprep.mubr.msk.f32.mxu0 %vm228_vm0, %v216_v18 }
  0x24   : > { %696 = vmatprep.mubr.msk.f32.mxu1 %vm228_vm0, %v224_v19  ;;  %449 = vperm.xlu1 %748, %v199_v24  }
  0x25   : > { %444 = vperm.xlu0 %747, %v198_v25  }
  0x26   : > { %685 = vmatmul.mubr.msk.f32.gmra.mrb[6].mxu0 %vm228_vm0, %v217_v22 }
  0x27   : > { %697 = vmatmul.mubr.msk.f32.gmra.mrb[6].mxu1 %vm228_vm0, %v225_v23 }
  0x28   : > { %459 = vperm.xlu1 %748, %v201_v26  }
  0x29   : > { %454 = vperm.xlu0 %747, %v200_v27  }
  0x2c   : > { %469 = vperm.xlu1 %748, %v203_v28  }
  0x2d   : > { %464 = vperm.xlu0 %747, %v202_v29  }
  0x30   : > { %479 = vperm.xlu1 %748, %v205_v30  }
  0x31   : > { %474 = vperm.xlu0 %747, %v204_v31  }
  0x34   : > { %489 = vperm.xlu1 %748, %v207_v32  }
  0x35   : > { %484 = vperm.xlu0 %747, %v206_v33  }
  0x38   : > { %499 = vperm.xlu1 %748, %v209_v34  }
  0x39   : > { %494 = vperm.xlu0 %747, %v208_v35  }
  0x9b   : > { %v435_v36 = vpop.permute.xlu1 %434 }
  0x9c   : > { %v425_v37 = vpop.permute.xlu0 %424 }
  0x9f   : > { %v440_v38 = vpop.permute.xlu1 %439 }
  0xa0   : > { %v430_v39 = vpop.permute.xlu0 %429 }
  0xa3   : > { %v450_v40 = vpop.permute.xlu1 %449 }
  0xa4   : > { %v445_v41 = vpop.permute.xlu0 %444 }
  0xa7   : > { %v460_v42 = vpop.permute.xlu1 %459 }
  0xa8   : > { %v455_v43 = vpop.permute.xlu0 %454 }
  0xab   : > { %v470_v44 = vpop.permute.xlu1 %469 }
  0xac   : > { %v465_v45 = vpop.permute.xlu0 %464 }
  0xaf   : > { %v480_v46 = vpop.permute.xlu1 %479 }
  0xb0   : > { %v475_v47 = vpop.permute.xlu0 %474 }
  0xb3   : > { %v490_v56 = vpop.permute.xlu1 %489 }
  0xb4   : > { %v485_v57 = vpop.permute.xlu0 %484 }
  0xb7   : > { %v500_v10 = vpop.permute.xlu1 %499 }
  0xb8   : > { %v495_v11 = vpop.permute.xlu0 %494 }
  0xed   : > { %v677_v48 = vpop.f32.mrb[0].mxu0 }
  0xee   : > { %v689_v49 = vpop.f32.mrb[0].mxu1  ;;  %v503_v50 = vmul.f32 %v677_v48, %v430_v39  ;;  %v343_v52 = vpop.f32.mrb[1].mxu0 }
  0xef   : > { %v511_v51 = vmul.f32 %v689_v49, %v470_v44  ;;  %v383_v53 = vpop.f32.mrb[1].mxu1  ;;  %v502_v54 = vmul.f32 %v425_v37, %v343_v52 }
  0xf0   : > { %v510_v55 = vmul.f32 %v465_v45, %v383_v53  ;;  %519 = vst [vmem:[%s953_s11 + $0x8] sm:$0xff] %v503_v50 }
  0xf1   : > { %527 = vst [vmem:[%s953_s11 + $0x48] sm:$0xff] %v511_v51  ;;  %518 = vst [vmem:[%s953_s11] sm:$0xff] %v502_v54  ;;  %v680_v58 = vpop.f32.mrb[2].mxu0 }
  0xf2   : > { %526 = vst [vmem:[%s953_s11 + $0x40] sm:$0xff] %v510_v55  ;;  %v692_v59 = vpop.f32.mrb[2].mxu1  ;;  %v505_v60 = vmul.f32 %v680_v58, %v440_v38  ;;  %v353_v62 = vpop.f32.mrb[3].mxu0 }
  0xf3   : > { %v513_v61 = vmul.f32 %v692_v59, %v480_v46  ;;  %v393_v63 = vpop.f32.mrb[3].mxu1  ;;  %v504_v0 = vmul.f32 %v435_v36, %v353_v62 }
  0xf4   : > { %v512_v1 = vmul.f32 %v475_v47, %v393_v63  ;;  %521 = vst [vmem:[%s953_s11 + $0x18] sm:$0xff] %v505_v60 }
  0xf5   : > { %529 = vst [vmem:[%s953_s11 + $0x58] sm:$0xff] %v513_v61  ;;  %520 = vst [vmem:[%s953_s11 + $0x10] sm:$0xff] %v504_v0  ;;  %v683_v2 = vpop.f32.mrb[4].mxu0 }
  0xf6   : > { %528 = vst [vmem:[%s953_s11 + $0x50] sm:$0xff] %v512_v1  ;;  %v695_v3 = vpop.f32.mrb[4].mxu1  ;;  %v507_v4 = vmul.f32 %v683_v2, %v450_v40  ;;  %v363_v6 = vpop.f32.mrb[5].mxu0 }
  0xf7   : > { %v515_v5 = vmul.f32 %v695_v3, %v490_v56  ;;  %v403_v7 = vpop.f32.mrb[5].mxu1  ;;  %v506_v8 = vmul.f32 %v445_v41, %v363_v6 }
  0xf8   : > { %v514_v9 = vmul.f32 %v485_v57, %v403_v7  ;;  %523 = vst [vmem:[%s953_s11 + $0x28] sm:$0xff] %v507_v4 }
  0xf9   : > { %531 = vst [vmem:[%s953_s11 + $0x68] sm:$0xff] %v515_v5  ;;  %522 = vst [vmem:[%s953_s11 + $0x20] sm:$0xff] %v506_v8  ;;  %v686_v12 = vpop.f32.mrb[6].mxu0 }
  0xfa   : > { %530 = vst [vmem:[%s953_s11 + $0x60] sm:$0xff] %v514_v9  ;;  %v698_v13 = vpop.f32.mrb[6].mxu1  ;;  %v509_v14 = vmul.f32 %v686_v12, %v460_v42  ;;  %v373_v16 = vpop.f32.mrb[7].mxu0 }
  0xfb   : > { %v517_v15 = vmul.f32 %v698_v13, %v500_v10  ;;  %v413_v17 = vpop.f32.mrb[7].mxu1  ;;  %v508_v18 = vmul.f32 %v455_v43, %v373_v16 }
  0xfc   : > { %v516_v19 = vmul.f32 %v495_v11, %v413_v17  ;;  %525 = vst [vmem:[%s953_s11 + $0x38] sm:$0xff] %v509_v14 }
  0xfd   : > { %533 = vst [vmem:[%s953_s11 + $0x78] sm:$0xff] %v517_v15  ;;  %524 = vst [vmem:[%s953_s11 + $0x30] sm:$0xff] %v508_v18 }
  0xfe   : > { %532 = vst [vmem:[%s953_s11 + $0x70] sm:$0xff] %v516_v19 }
  0xff   : > { %762 = shalt.err (!%p759_p3)
}
 0x100   : > { %s763_s30 = scalar_lea.hbm %s972_s24, 2048  ;;  %s767_s6 = scalar_lea.hbm %s1026_s3, 4096 }
 0x101   : > { %p764_p4 = scmp.ne.s32.totalorder %s972_s24, %s763_s30  ;;  %p768_p9 = scmp.lt.u32.totalorder %s972_s24, %s1026_s3 }
 0x102   : > { %p769_p10 = scmp.lt.u32.totalorder %s767_s6, %s763_s30  ;;  %p771_p12 = scmp.lt.u32.totalorder %s763_s30, %s972_s24 }
 0x103   : > { %p765_p7 = pnand %p764_p4, %p875_p5 }
 0x104   : > { %p770_p11 = por %p769_p10, %p768_p9 }
 0x105   : > { %p766_p8 = pneg %p765_p7 }
 0x106   : > { %p772_p13 = por %p771_p12, %p770_p11 }
 0x108   : > { %p773_p0 = pnand %p772_p13, %p766_p8 }
 0x10a   : > { %776 = shalt.err (!%p773_p0)
}
 0x10b   : > { %s815_s9 = smov 128   ;;  %s816_s10 = smov 8  }
 0x10c   : > { %705 = dma.vmem_to_hbm [thread:$0]  (%p875_p5), %s974_s19, 2048, %s972_s24, %s982_s25, %s815_s9, %s815_s9, %s816_s10  }
 0x10d PF: > { %p711_p1 = scmp.ge.s32.totalorder %s811_s15, 2  ;;  %s563_s11 = sand.u32 1, %s799_s12  }
 0x10e   : > { %s564_s17 = scalar_lea.sflag [#allocation3], %s563_s11 }
 0x10f   : > { %p708_p2 = pnand %p711_p1, %p879_p6 }
 0x111   : > { %794 = dma.done.wait (!%p708_p2), %s564_s17, 2048  }
 0x112   : > { %796 = vsyncadd (!%p708_p2), %s564_s17, 4294965248  ;;  %p13_p3 = scmp.ge.s32.totalorder %s862_s18, 4   ;;  %s1029_s12 = smov %s803_s13 }
 0x113   : > { %s1030_s13 = smov %s807_s14  ;;  %s1031_s14 = smov %s873_s21 }
 0x114   : > { %s1032_s15 = smov %s862_s18  ;;  %15 = sbr.rel (!%p13_p3) target bundleno = 3 (0x3), region = 70 }
 0x11b   :  { %569 = vsyncpa [#allocation3], 1 }
 0x11c   :  { %571 = vsyncpa [#allocation3 + $0x1], 1 }

</bundles_post_ra>
